<compile_context>
chip_gen: v5e
topology: v5e:2x2
jax: 0.10.0
libtpu: 0.0.40
codegen_flags: <defaults>
</compile_context>

<pallas_src>
import functools

import jax
import jax.numpy as jnp
from jax import lax
from jax.experimental import pallas as pl
from jax.experimental.pallas import tpu as pltpu

C_IN = 96      # conv1d_in input channels / conv1d_out output channels
C_HID = 256    # hidden width
C_KEY = 2      # key_frame_embeding input features
C_PAD = 128    # padded (lane-dense) channel width
K = 3          # conv kernel width (padding=1 -> "same")
HALO_BLK = 8   # sublane-aligned halo block (rows)


def _round_up(x, m):
    return (x + m - 1) // m * m


def _prediction_kernel(x_ref, xp_ref, xn_ref, w1_ref, b1_ref, w2_ref, b2_ref,
                       o_ref, *, tile_t, t_total, t_axis):
    """One (batch, T-tile) block per grid step.

    x_ref : (1, tile_t, 128) bf16  current tile of [x1 | key_frame | zeros]
    xp_ref: (1, 8, 128)      bf16  8 rows preceding the tile (block idx clamped)
    xn_ref: (1, 8, 128)      bf16  8 rows following the tile (block idx clamped)
    w1_ref: (3, 128, 256)    bf16  conv_in taps (+ key Linear folded into tap 1)
    b1_ref: (1, 256)         f32   conv_in bias + key bias
    w2_ref: (3, 256, 128)    bf16  conv_out taps (output channels zero-padded)
    b2_ref: (1, 128)         f32
    o_ref : (1, tile_t, 128) f32
    """
    t0 = pl.program_id(t_axis) * tile_t

    x_cur = x_ref[0]
    x_prev = xp_ref[0]
    x_next = xn_ref[0]

    # x_ext row j  <->  global time t0 - 2 + j
    x_ext = jnp.concatenate([x_prev[HALO_BLK - 2:], x_cur, x_next[:2]], axis=0)
    tx = t0 - 2 + lax.broadcasted_iota(jnp.int32, (tile_t + 4, C_PAD), 0)
    x_ext = jnp.where((tx >= 0) & (tx < t_total), x_ext, jnp.zeros_like(x_ext))

    xk0 = x_ext[0:tile_t + 2]        # x[t-1] for each h row
    xk1 = x_ext[1:tile_t + 3]        # x[t]
    xk2 = x_ext[2:tile_t + 4]        # x[t+1]

    # Conv1d(96->256, k=3, pad=1) + Key_frame_embeding (folded into w1[1]
    # lanes 96:98) + pre-summed biases.  h row m <-> global time t0 - 1 + m.
    h = (jnp.dot(xk0, w1_ref[0], preferred_element_type=jnp.float32)
         + jnp.dot(xk1, w1_ref[1], preferred_element_type=jnp.float32)
         + jnp.dot(xk2, w1_ref[2], preferred_element_type=jnp.float32)
         + b1_ref[0])

    # TODO(synk): self.slerp_transformer is never defined in the reference
    # __init__ -> treated as identity.  dropout_out(p=0.2) is identity at inference.

    th = t0 - 1 + lax.broadcasted_iota(jnp.int32, (tile_t + 2, C_HID), 0)
    h = jnp.where((th >= 0) & (th < t_total), h, jnp.zeros_like(h))
    hb = h.astype(jnp.bfloat16)

    # Conv1d(256->96, k=3, pad=1) + residual.
    out = (jnp.dot(hb[0:tile_t], w2_ref[0], preferred_element_type=jnp.float32)
           + jnp.dot(hb[1:tile_t + 1], w2_ref[1], preferred_element_type=jnp.float32)
           + jnp.dot(hb[2:tile_t + 2], w2_ref[2], preferred_element_type=jnp.float32)
           + b2_ref[0]
           + xk1[1:tile_t + 1].astype(jnp.float32))   # residual x[t0 : t0+tile_t]

    o_ref[0] = out.astype(o_ref.dtype)


def pack_params(params):
    """One-time repack of PyTorch-layout params into kernel layouts."""
    w1 = jnp.transpose(params["conv_in_w"], (2, 1, 0))            # (3, 96, 256)
    w1 = jnp.pad(w1, ((0, 0), (0, C_PAD - C_IN), (0, 0)))         # (3, 128, 256)
    wk = jnp.transpose(params["key_w"], (1, 0))                   # (2, 256)
    w1 = w1.at[1, C_IN:C_IN + C_KEY, :].set(wk)                   # fold Linear(2->256)
    b1 = (params["conv_in_b"] + params["key_b"])[None, :]         # (1, 256)
    w2 = jnp.transpose(params["conv_out_w"], (2, 1, 0))           # (3, 256, 96)
    w2 = jnp.pad(w2, ((0, 0), (0, 0), (0, C_PAD - C_IN)))         # (3, 256, 128)
    b2 = jnp.pad(params["conv_out_b"], (0, C_PAD - C_IN))[None, :]
    return {
        "w1": w1.astype(jnp.bfloat16),
        "b1": b1.astype(jnp.float32),
        "w2": w2.astype(jnp.bfloat16),
        "b2": b2.astype(jnp.float32),
    }


@functools.partial(jax.jit, static_argnames=("tile_t_target",))
def prediction_forward(x1, key_frame, packed, tile_t_target=512):
    """x1: (B, T, 96) f32, key_frame: (B, T, 2) f32 -> (B, T, 96) f32."""
    B, T, _ = x1.shape
    tile_t = min(tile_t_target, _round_up(T, HALO_BLK))
    t_pad = _round_up(T, tile_t)
    nt = t_pad // tile_t
    r8 = tile_t // HALO_BLK
    nb8 = t_pad // HALO_BLK

    # Pack x1 (96 ch) + key_frame (2 ch) into a lane-dense 128-channel bf16 slab.
    xkf = jnp.concatenate(
        [x1, key_frame,
         jnp.zeros((B, T, C_PAD - C_IN - C_KEY), x1.dtype)], axis=-1)
    xkf = jnp.pad(xkf, ((0, 0), (0, t_pad - T), (0, 0))).astype(jnp.bfloat16)

    # Index maps expressed as f(b, t); swapped below if the T axis leads.
    maps = {
        "x":    lambda b, t: (b, t, 0),
        "prev": lambda b, t: (b, jnp.maximum(t * r8 - 1, 0), 0),
        "next": lambda b, t: (b, jnp.minimum((t + 1) * r8, nb8 - 1), 0),
        "w":    lambda b, t: (0, 0, 0),
        "bias": lambda b, t: (0, 0),
    }
    if nt > B:
        # Lead with the T-tile axis so a single-batch call still shards across
        # both TensorCores on v7x.
        maps = {k: (lambda t, b, f=f: f(b, t)) for k, f in maps.items()}
        grid, t_axis = (nt, B), 0
    else:
        grid, t_axis = (B, nt), 1

    kernel = functools.partial(_prediction_kernel, tile_t=tile_t, t_total=T,
                               t_axis=t_axis)

    out = pl.pallas_call(
        kernel,
        out_shape=jax.ShapeDtypeStruct((B, t_pad, C_PAD), jnp.float32),
        grid_spec=pltpu.PrefetchScalarGridSpec(
            num_scalar_prefetch=0,
            grid=grid,
            in_specs=[
                pl.BlockSpec((1, tile_t, C_PAD), maps["x"]),        # x tile
                pl.BlockSpec((1, HALO_BLK, C_PAD), maps["prev"]),   # prev halo
                pl.BlockSpec((1, HALO_BLK, C_PAD), maps["next"]),   # next halo
                pl.BlockSpec((K, C_PAD, C_HID), maps["w"]),         # w1
                pl.BlockSpec((1, C_HID), maps["bias"]),             # b1 (+key bias)
                pl.BlockSpec((K, C_HID, C_PAD), maps["w"]),         # w2
                pl.BlockSpec((1, C_PAD), maps["bias"]),             # b2
            ],
            out_specs=pl.BlockSpec((1, tile_t, C_PAD), maps["x"]),
        ),
        compiler_params=pltpu.CompilerParams(
            dimension_semantics=("parallel", "parallel"),
            vmem_limit_bytes=32 * 1024 * 1024),
    )(xkf, xkf, xkf, packed["w1"], packed["b1"], packed["w2"], packed["b2"])

    return out[:, :T, :C_IN]


def _reference_forward(x1, key_frame, params):
    """Pure-JAX f32 reference (mirrors the PyTorch NCW conv path)."""
    xt = jnp.transpose(x1, (0, 2, 1))  # (B, 96, T)
    y = lax.conv_general_dilated(
        xt, params["conv_in_w"], window_strides=(1,), padding=((1, 1),),
        dimension_numbers=("NCH", "OIH", "NCH"))
    y = y + params["conv_in_b"][None, :, None]
    y = jnp.transpose(y, (0, 2, 1))                      # (B, T, 256)
    kfe = key_frame @ params["key_w"].T + params["key_b"]
    h = y + kfe                                          # transformer/dropout = id
    ht = jnp.transpose(h, (0, 2, 1))
    o = lax.conv_general_dilated(
        ht, params["conv_out_w"], window_strides=(1,), padding=((1, 1),),
        dimension_numbers=("NCH", "OIH", "NCH"))
    o = o + params["conv_out_b"][None, :, None]
    o = jnp.transpose(o, (0, 2, 1))
    return o + x1


def init_params(key):
    ks = jax.random.split(key, 6)
    scale_in = 1.0 / jnp.sqrt(C_IN * K)
    scale_hid = 1.0 / jnp.sqrt(C_HID * K)
    scale_key = 1.0 / jnp.sqrt(C_KEY)
    return {
        # PyTorch Conv1d weight layout: (out_ch, in_ch, k)
        "conv_in_w": scale_in * jax.random.normal(ks[0], (C_HID, C_IN, K), jnp.float32),
        "conv_in_b": scale_in * jax.random.normal(ks[1], (C_HID,), jnp.float32),
        "conv_out_w": scale_hid * jax.random.normal(ks[2], (C_IN, C_HID, K), jnp.float32),
        "conv_out_b": scale_hid * jax.random.normal(ks[3], (C_IN,), jnp.float32),
        # PyTorch Linear weight layout: (out_features, in_features)
        "key_w": scale_key * jax.random.normal(ks[4], (C_HID, C_KEY), jnp.float32),
        "key_b": scale_key * jax.random.normal(ks[5], (C_HID,), jnp.float32),
    }


if __name__ == "__main__":
    key = jax.random.PRNGKey(0)
    k_p, k_x, k_f, k_x2, k_f2 = jax.random.split(key, 5)

    params = init_params(k_p)
    packed = pack_params(params)   # weights repacked once, outside the forward

    # Primary small shape implied by the module.
    B, T = 2, 8
    x1 = jax.random.normal(k_x, (B, T, C_IN), jnp.float32)
    key_frame = jax.random.normal(k_f, (B, T, C_KEY), jnp.float32)

    out = jax.block_until_ready(prediction_forward(x1, key_frame, packed))
    ref = _reference_forward(x1, key_frame, params)
    assert out.shape == (B, T, C_IN)
    assert jnp.allclose(out, ref, atol=5e-2, rtol=5e-2), "mismatch vs JAX reference"

    # Second check: multi-tile grid (exercises the halo blocks and the
    # T-axis-leading grid order) with a non-divisible sequence length.
    B2, T2 = 2, 21
    x1b = jax.random.normal(k_x2, (B2, T2, C_IN), jnp.float32)
    kfb = jax.random.normal(k_f2, (B2, T2, C_KEY), jnp.float32)
    out2 = jax.block_until_ready(
        prediction_forward(x1b, kfb, packed, tile_t_target=8))
    ref2 = _reference_forward(x1b, kfb, params)
    assert out2.shape == (B2, T2, C_IN)
    assert jnp.allclose(out2, ref2, atol=5e-2, rtol=5e-2), "tiled mismatch vs reference"

    print("KERNEL_OK")
</pallas_src>

<mosaic_0001>
module attributes {stable_mosaic.version = 11 : i64} {
  func.func @_prediction_kernel(%arg0: i32, %arg1: i32, %arg2: memref<1x8x128xbf16, #tpu.memory_space<vmem>>, %arg3: memref<1x8x128xbf16, #tpu.memory_space<vmem>>, %arg4: memref<1x8x128xbf16, #tpu.memory_space<vmem>>, %arg5: memref<3x128x256xbf16, #tpu.memory_space<vmem>>, %arg6: memref<1x256xf32, #tpu.memory_space<vmem>>, %arg7: memref<3x256x128xbf16, #tpu.memory_space<vmem>>, %arg8: memref<1x128xf32, #tpu.memory_space<vmem>>, %arg9: memref<1x8x128xf32, #tpu.memory_space<vmem>>) attributes {dimension_semantics = [#tpu.dimension_semantics<parallel>, #tpu.dimension_semantics<parallel>], iteration_bounds = array<i64: 2, 1>, scalar_prefetch = 0 : i64, scratch_operands = 0 : i64, tpu.core_type = #tpu.core_type<tc>, window_params = [{transform_indices = @transform_0, window_bounds = array<i64: 1, 8, 128>}, {transform_indices = @transform_1, window_bounds = array<i64: 1, 8, 128>}, {transform_indices = @transform_2, window_bounds = array<i64: 1, 8, 128>}, {pipeline_mode = #tpu.pipeline_mode<synchronous>, transform_indices = @transform_3, window_bounds = array<i64: 3, 128, 256>}, {pipeline_mode = #tpu.pipeline_mode<synchronous>, transform_indices = @transform_4, window_bounds = array<i64: 1, 256>}, {pipeline_mode = #tpu.pipeline_mode<synchronous>, transform_indices = @transform_5, window_bounds = array<i64: 3, 256, 128>}, {pipeline_mode = #tpu.pipeline_mode<synchronous>, transform_indices = @transform_6, window_bounds = array<i64: 1, 128>}, {transform_indices = @transform_7, window_bounds = array<i64: 1, 8, 128>}]} {
    %c8_i32 = arith.constant 8 : i32
    %0 = arith.muli %arg1, %c8_i32 : i32
    %c0 = arith.constant 0 : index
    %c0_0 = arith.constant 0 : index
    %c0_1 = arith.constant 0 : index
    %1 = vector.load %arg2[%c0, %c0_0, %c0_1] : memref<1x8x128xbf16, #tpu.memory_space<vmem>>, vector<1x8x128xbf16>
    %2 = vector.shape_cast %1 : vector<1x8x128xbf16> to vector<8x128xbf16>
    %c0_2 = arith.constant 0 : index
    %c0_3 = arith.constant 0 : index
    %c0_4 = arith.constant 0 : index
    %3 = vector.load %arg3[%c0_2, %c0_3, %c0_4] : memref<1x8x128xbf16, #tpu.memory_space<vmem>>, vector<1x8x128xbf16>
    %4 = vector.shape_cast %3 : vector<1x8x128xbf16> to vector<8x128xbf16>
    %c0_5 = arith.constant 0 : index
    %c0_6 = arith.constant 0 : index
    %c0_7 = arith.constant 0 : index
    %5 = vector.load %arg4[%c0_5, %c0_6, %c0_7] : memref<1x8x128xbf16, #tpu.memory_space<vmem>>, vector<1x8x128xbf16>
    %6 = vector.shape_cast %5 : vector<1x8x128xbf16> to vector<8x128xbf16>
    %7 = vector.extract_strided_slice %4 {offsets = [6, 0], sizes = [2, 128], strides = [1, 1]} : vector<8x128xbf16> to vector<2x128xbf16>
    %8 = vector.extract_strided_slice %6 {offsets = [0, 0], sizes = [2, 128], strides = [1, 1]} : vector<8x128xbf16> to vector<2x128xbf16>
    %9 = tpu.concatenate %7, %2, %8 in 0 : vector<2x128xbf16>, vector<8x128xbf16>, vector<2x128xbf16> -> vector<12x128xbf16>
    %c2_i32 = arith.constant 2 : i32
    %10 = arith.subi %0, %c2_i32 : i32
    %11 = tpu.iota {dimensions = array<i32: 0>} : vector<12x128xi32>
    %12 = vector.broadcast %10 : i32 to vector<12x128xi32>
    %13 = arith.addi %12, %11 : vector<12x128xi32>
    %c0_i32 = arith.constant 0 : i32
    %14 = vector.broadcast %c0_i32 : i32 to vector<12x128xi32>
    %15 = arith.cmpi sge, %13, %14 : vector<12x128xi32>
    %c8_i32_8 = arith.constant 8 : i32
    %16 = vector.broadcast %c8_i32_8 : i32 to vector<12x128xi32>
    %17 = arith.cmpi slt, %13, %16 : vector<12x128xi32>
    %18 = arith.andi %15, %17 : vector<12x128xi1>
    %cst = arith.constant 0.000000e+00 : bf16
    %19 = vector.broadcast %cst : bf16 to vector<12x128xbf16>
    %20 = arith.select %18, %9, %19 : vector<12x128xi1>, vector<12x128xbf16>
    %21 = vector.extract_strided_slice %20 {offsets = [0, 0], sizes = [10, 128], strides = [1, 1]} : vector<12x128xbf16> to vector<10x128xbf16>
    %22 = vector.extract_strided_slice %20 {offsets = [1, 0], sizes = [10, 128], strides = [1, 1]} : vector<12x128xbf16> to vector<10x128xbf16>
    %23 = vector.extract_strided_slice %20 {offsets = [2, 0], sizes = [10, 128], strides = [1, 1]} : vector<12x128xbf16> to vector<10x128xbf16>
    %c0_9 = arith.constant 0 : index
    %c0_10 = arith.constant 0 : index
    %c0_11 = arith.constant 0 : index
    %24 = vector.load %arg5[%c0_9, %c0_10, %c0_11] : memref<3x128x256xbf16, #tpu.memory_space<vmem>>, vector<1x128x256xbf16>
    %25 = vector.shape_cast %24 : vector<1x128x256xbf16> to vector<128x256xbf16>
    %cst_12 = arith.constant dense<0.000000e+00> : vector<10x256xf32>
    %26 = tpu.matmul %21, %25, %cst_12 {dimension_numbers = #tpu.dot_dimension_numbers<[1], [0], [0], [1], [0, 0, 1, 1], [], []>} : vector<10x128xbf16>, vector<128x256xbf16>, vector<10x256xf32> -> vector<10x256xf32>
    %c1 = arith.constant 1 : index
    %c0_13 = arith.constant 0 : index
    %c0_14 = arith.constant 0 : index
    %27 = vector.load %arg5[%c1, %c0_13, %c0_14] : memref<3x128x256xbf16, #tpu.memory_space<vmem>>, vector<1x128x256xbf16>
    %28 = vector.shape_cast %27 : vector<1x128x256xbf16> to vector<128x256xbf16>
    %cst_15 = arith.constant dense<0.000000e+00> : vector<10x256xf32>
    %29 = tpu.matmul %22, %28, %cst_15 {dimension_numbers = #tpu.dot_dimension_numbers<[1], [0], [0], [1], [0, 0, 1, 1], [], []>} : vector<10x128xbf16>, vector<128x256xbf16>, vector<10x256xf32> -> vector<10x256xf32>
    %30 = arith.addf %26, %29 : vector<10x256xf32>
    %c2 = arith.constant 2 : index
    %c0_16 = arith.constant 0 : index
    %c0_17 = arith.constant 0 : index
    %31 = vector.load %arg5[%c2, %c0_16, %c0_17] : memref<3x128x256xbf16, #tpu.memory_space<vmem>>, vector<1x128x256xbf16>
    %32 = vector.shape_cast %31 : vector<1x128x256xbf16> to vector<128x256xbf16>
    %cst_18 = arith.constant dense<0.000000e+00> : vector<10x256xf32>
    %33 = tpu.matmul %23, %32, %cst_18 {dimension_numbers = #tpu.dot_dimension_numbers<[1], [0], [0], [1], [0, 0, 1, 1], [], []>} : vector<10x128xbf16>, vector<128x256xbf16>, vector<10x256xf32> -> vector<10x256xf32>
    %34 = arith.addf %30, %33 : vector<10x256xf32>
    %c0_19 = arith.constant 0 : index
    %c0_20 = arith.constant 0 : index
    %35 = vector.load %arg6[%c0_19, %c0_20] : memref<1x256xf32, #tpu.memory_space<vmem>>, vector<1x256xf32>
    %36 = vector.shape_cast %35 : vector<1x256xf32> to vector<256xf32>
    %37 = vector.shape_cast %36 : vector<256xf32> to vector<1x256xf32>
    %38 = vector.broadcast %37 : vector<1x256xf32> to vector<10x256xf32>
    %39 = arith.addf %34, %38 : vector<10x256xf32>
    %c1_i32 = arith.constant 1 : i32
    %40 = arith.subi %0, %c1_i32 : i32
    %41 = tpu.iota {dimensions = array<i32: 0>} : vector<10x256xi32>
    %42 = vector.broadcast %40 : i32 to vector<10x256xi32>
    %43 = arith.addi %42, %41 : vector<10x256xi32>
    %c0_i32_21 = arith.constant 0 : i32
    %44 = vector.broadcast %c0_i32_21 : i32 to vector<10x256xi32>
    %45 = arith.cmpi sge, %43, %44 : vector<10x256xi32>
    %c8_i32_22 = arith.constant 8 : i32
    %46 = vector.broadcast %c8_i32_22 : i32 to vector<10x256xi32>
    %47 = arith.cmpi slt, %43, %46 : vector<10x256xi32>
    %48 = arith.andi %45, %47 : vector<10x256xi1>
    %cst_23 = arith.constant 0.000000e+00 : f32
    %49 = vector.broadcast %cst_23 : f32 to vector<10x256xf32>
    %50 = arith.select %48, %39, %49 : vector<10x256xi1>, vector<10x256xf32>
    %51 = arith.truncf %50 : vector<10x256xf32> to vector<10x256xbf16>
    %52 = vector.extract_strided_slice %51 {offsets = [0, 0], sizes = [8, 256], strides = [1, 1]} : vector<10x256xbf16> to vector<8x256xbf16>
    %c0_24 = arith.constant 0 : index
    %c0_25 = arith.constant 0 : index
    %c0_26 = arith.constant 0 : index
    %53 = vector.load %arg7[%c0_24, %c0_25, %c0_26] : memref<3x256x128xbf16, #tpu.memory_space<vmem>>, vector<1x256x128xbf16>
    %54 = vector.shape_cast %53 : vector<1x256x128xbf16> to vector<256x128xbf16>
    %cst_27 = arith.constant dense<0.000000e+00> : vector<8x128xf32>
    %55 = tpu.matmul %52, %54, %cst_27 {dimension_numbers = #tpu.dot_dimension_numbers<[1], [0], [0], [1], [0, 0, 1, 1], [], []>} : vector<8x256xbf16>, vector<256x128xbf16>, vector<8x128xf32> -> vector<8x128xf32>
    %56 = vector.extract_strided_slice %51 {offsets = [1, 0], sizes = [8, 256], strides = [1, 1]} : vector<10x256xbf16> to vector<8x256xbf16>
    %c1_28 = arith.constant 1 : index
    %c0_29 = arith.constant 0 : index
    %c0_30 = arith.constant 0 : index
    %57 = vector.load %arg7[%c1_28, %c0_29, %c0_30] : memref<3x256x128xbf16, #tpu.memory_space<vmem>>, vector<1x256x128xbf16>
    %58 = vector.shape_cast %57 : vector<1x256x128xbf16> to vector<256x128xbf16>
    %cst_31 = arith.constant dense<0.000000e+00> : vector<8x128xf32>
    %59 = tpu.matmul %56, %58, %cst_31 {dimension_numbers = #tpu.dot_dimension_numbers<[1], [0], [0], [1], [0, 0, 1, 1], [], []>} : vector<8x256xbf16>, vector<256x128xbf16>, vector<8x128xf32> -> vector<8x128xf32>
    %60 = arith.addf %55, %59 : vector<8x128xf32>
    %61 = vector.extract_strided_slice %51 {offsets = [2, 0], sizes = [8, 256], strides = [1, 1]} : vector<10x256xbf16> to vector<8x256xbf16>
    %c2_32 = arith.constant 2 : index
    %c0_33 = arith.constant 0 : index
    %c0_34 = arith.constant 0 : index
    %62 = vector.load %arg7[%c2_32, %c0_33, %c0_34] : memref<3x256x128xbf16, #tpu.memory_space<vmem>>, vector<1x256x128xbf16>
    %63 = vector.shape_cast %62 : vector<1x256x128xbf16> to vector<256x128xbf16>
    %cst_35 = arith.constant dense<0.000000e+00> : vector<8x128xf32>
    %64 = tpu.matmul %61, %63, %cst_35 {dimension_numbers = #tpu.dot_dimension_numbers<[1], [0], [0], [1], [0, 0, 1, 1], [], []>} : vector<8x256xbf16>, vector<256x128xbf16>, vector<8x128xf32> -> vector<8x128xf32>
    %65 = arith.addf %60, %64 : vector<8x128xf32>
    %c0_36 = arith.constant 0 : index
    %c0_37 = arith.constant 0 : index
    %66 = vector.load %arg8[%c0_36, %c0_37] : memref<1x128xf32, #tpu.memory_space<vmem>>, vector<1x128xf32>
    %67 = vector.shape_cast %66 : vector<1x128xf32> to vector<128xf32>
    %68 = vector.shape_cast %67 : vector<128xf32> to vector<1x128xf32>
    %69 = vector.broadcast %68 : vector<1x128xf32> to vector<8x128xf32>
    %70 = arith.addf %65, %69 : vector<8x128xf32>
    %71 = vector.extract_strided_slice %22 {offsets = [1, 0], sizes = [8, 128], strides = [1, 1]} : vector<10x128xbf16> to vector<8x128xbf16>
    %72 = arith.extf %71 : vector<8x128xbf16> to vector<8x128xf32>
    %73 = arith.addf %70, %72 : vector<8x128xf32>
    %c0_38 = arith.constant 0 : index
    %c0_39 = arith.constant 0 : index
    %c0_40 = arith.constant 0 : index
    %74 = vector.load %arg9[%c0_38, %c0_39, %c0_40] : memref<1x8x128xf32, #tpu.memory_space<vmem>>, vector<1x8x128xf32>
    %75 = vector.shape_cast %74 : vector<1x8x128xf32> to vector<8x128xf32>
    %76 = vector.shape_cast %73 : vector<8x128xf32> to vector<1x8x128xf32>
    tpu.vector_store %arg9[%c0_38, %c0_39, %c0_40], %76 {strides = array<i32>} : memref<1x8x128xf32, #tpu.memory_space<vmem>>, vector<1x8x128xf32>,
    return
  }
  func.func @transform_0(%arg0: i32, %arg1: i32) -> (i32, i32, i32) {
    %c0_i32 = arith.constant 0 : i32
    %c0_i32_0 = arith.constant 0 : i32
    return %arg0, %arg1, %c0_i32 : i32, i32, i32
  }
  func.func @transform_1(%arg0: i32, %arg1: i32) -> (i32, i32, i32) {
    %c1_i32 = arith.constant 1 : i32
    %0 = arith.muli %arg1, %c1_i32 : i32
    %c1_i32_0 = arith.constant 1 : i32
    %1 = arith.subi %0, %c1_i32_0 : i32
    %c0_i32 = arith.constant 0 : i32
    %2 = arith.maxsi %1, %c0_i32 : i32
    %c0_i32_1 = arith.constant 0 : i32
    %c0_i32_2 = arith.constant 0 : i32
    return %arg0, %2, %c0_i32_1 : i32, i32, i32
  }
  func.func @transform_2(%arg0: i32, %arg1: i32) -> (i32, i32, i32) {
    %c1_i32 = arith.constant 1 : i32
    %0 = arith.addi %arg1, %c1_i32 : i32
    %c1_i32_0 = arith.constant 1 : i32
    %1 = arith.muli %0, %c1_i32_0 : i32
    %c0_i32 = arith.constant 0 : i32
    %2 = arith.minsi %1, %c0_i32 : i32
    %c0_i32_1 = arith.constant 0 : i32
    %c0_i32_2 = arith.constant 0 : i32
    return %arg0, %2, %c0_i32_1 : i32, i32, i32
  }
  func.func @transform_3(%arg0: i32, %arg1: i32) -> (i32, i32, i32) {
    %c0_i32 = arith.constant 0 : i32
    %c0_i32_0 = arith.constant 0 : i32
    %c0_i32_1 = arith.constant 0 : i32
    %c0_i32_2 = arith.constant 0 : i32
    return %c0_i32, %c0_i32_0, %c0_i32_1 : i32, i32, i32
  }
  func.func @transform_4(%arg0: i32, %arg1: i32) -> (i32, i32) {
    %c0_i32 = arith.constant 0 : i32
    %c0_i32_0 = arith.constant 0 : i32
    %c0_i32_1 = arith.constant 0 : i32
    return %c0_i32, %c0_i32_0 : i32, i32
  }
  func.func @transform_5(%arg0: i32, %arg1: i32) -> (i32, i32, i32) {
    %c0_i32 = arith.constant 0 : i32
    %c0_i32_0 = arith.constant 0 : i32
    %c0_i32_1 = arith.constant 0 : i32
    %c0_i32_2 = arith.constant 0 : i32
    return %c0_i32, %c0_i32_0, %c0_i32_1 : i32, i32, i32
  }
  func.func @transform_6(%arg0: i32, %arg1: i32) -> (i32, i32) {
    %c0_i32 = arith.constant 0 : i32
    %c0_i32_0 = arith.constant 0 : i32
    %c0_i32_1 = arith.constant 0 : i32
    return %c0_i32, %c0_i32_0 : i32, i32
  }
  func.func @transform_7(%arg0: i32, %arg1: i32) -> (i32, i32, i32) {
    %c0_i32 = arith.constant 0 : i32
    %c0_i32_0 = arith.constant 0 : i32
    return %arg0, %arg1, %c0_i32 : i32, i32, i32
  }
}

</mosaic_0001>

<bundles_post_ra>
// kernel: prediction_forward.1
= control target key start
LH: loop header
LB: loop body
LE: loop exit
PB: predicated region body
PF: predicated region fallthrough
CT: control target
= control target key end

     0   :  { %s2502_s0 = inlined_call_operand.vmem [shape: bf16[2,8,128], index: 0, kind: input, shape index: {}, may-alias: {0,1,2}]   ;;  %s2503_s1 = inlined_call_operand.vmem [shape: bf16[2,8,128], index: 1, kind: input, shape index: {}, may-alias: {0,1,2}]   ;;  %s2504_s2 = inlined_call_operand.vmem [shape: bf16[2,8,128], index: 2, kind: input, shape index: {}, may-alias: {0,1,2}]   ;;  %s2505_s3 = inlined_call_operand.hbm [shape: bf16[3,128,256], index: 3, kind: input, shape index: {}]   ;;  %s2506_s4 = inlined_call_operand.vmem [shape: f32[1,256], index: 4, kind: input, shape index: {}]   ;;  %s2507_s5 = inlined_call_operand.hbm [shape: bf16[3,256,128], index: 5, kind: input, shape index: {}]   ;;  %s2508_s6 = inlined_call_operand.vmem [shape: f32[1,128], index: 6, kind: input, shape index: {}]   ;;  %s2509_s7 = inlined_call_operand.hbm [shape: f32[2,8,128], index: 7, kind: output, shape index: {}]  }
   0x1   :  { %2510 = sst [smem:[#allocation11_spill]] %s2505_s3 }
   0x2   :  { %12 = vsyncpa [#allocation3], 0 }
   0x3   :  { %13 = vsyncpa [#allocation6], 0 }
   0x4   :  { %14 = vsyncpa [#allocation4], 0 }
   0x5   :  { %16 = vsyncpa [#allocation4 + $0x1], 0  ;;  %s2330_s24 = smov 0   ;;  %s2332_s25 = smov 0  }
   0x6   :  { %s2334_s26 = smov 0   ;;  %s2336_s27 = smov 0  }
   0x7   :  { %s2338_s28 = smov 0   ;;  %s2340_s29 = smov 0  }
   0x8 LB: > { %s1554_s30 = sadd.s32 4294967295, %s2281_s29   ;;  %s1555_s8 = sadd.s32 4294967294, %s2281_s29   ;;  %s2281_s29 = sphi %s2340_s29, %s22_s29   ;;  %s2277_s28 = sphi %s2338_s28, %s2520_s28   ;;  %s2273_s27 = sphi %s2336_s27, %s2519_s27   ;;  %s2269_s26 = sphi %s2334_s26, %s2518_s26   ;;  %s2265_s25 = sphi %s2332_s25, %s2517_s25   ;;  %s2261_s24 = sphi %s2330_s24, %s2516_s24  }
   0x9   : > { %s34_s9 = sadd.s32 1, %s2277_s28  ;;  %s223_s10 = sadd.s32 1, %s2269_s26 }
   0xa   : > { %p36_p0 = scmp.ge.s32.totalorder %s34_s9, 2  ;;  %p233_p1 = scmp.ne.s32.totalorder %s2269_s26, %s2265_s25 }
   0xb   : > { %p234_p2 = scmp.eq.s32.totalorder %s1554_s30, 1  ;;  %p239_p3 = scmp.ne.s32.totalorder %s2265_s25, %s2261_s24 }
   0xc   : > { %s2522_s9 = smov (%p36_p0, %s34_s9), 0  ;;  %p240_p5 = scmp.eq.s32.totalorder %s1555_s8, 1 }
   0xd   : > { %p2370_p4 = por %p234_p2, %p233_p1  ;;  %s218_s12 = ssub.s32 %s2277_s28, %s2522_s9 }
   0xe   : > { %p1556_p6 = scmp.ge.s32.totalorder %s2281_s29, 1  ;;  %p221_p7 = scmp.eq.s32.totalorder %s218_s12, 0 }
   0xf   : > { %p2377_p8 = por %p240_p5, %p239_p3  ;;  %p247_p9 = scmp.lt.s32.totalorder %s2281_s29, 3 }
  0x10   : > { %s2383_s14 = scalar_select %p221_p7, %s2269_s26, %s223_s10  }
  0x11   : > { %p2385_p10 = pnand %p1556_p6, %p247_p9  ;;  %p2389_p11 = scmp.eq.s32.totalorder %s1554_s30, 0 }
  0x12   : > { %s2515_s3 = sld [smem:[#allocation11_spill]]  ;;  %s2283_s20 = smov [#allocation2]  }
  0x13   : > { %p2063_p12 = pneg %p2385_p10  ;;  %s260_s21 = sshll.u32 %s2283_s20, 4  ;;  %s261_s21 = int_to_ptr.vmem [resolvable:$true] %s260_s21 }
  0x14   : > { %s275_s30 = sshll.u32 %s2507_s5, 4  ;;  %s2284_s8 = smov 128   ;;  %s276_s30 = int_to_ptr.hbm [resolvable:$true] %s275_s30 }
  0x15   : > { %p2064_p13 = pnand %p2389_p11, %p2063_p12  ;;  %s2285_s10 = smov 8  }
  0x16   : > { %s2286_s12 = smov [#allocation5]   ;;  %s2287_s18 = smov 64  }
  0x17   : > { %s277_s17 = sshll.u32 %s2286_s12, 4  ;;  %338 = sbr.rel (%p2385_p10) target bundleno = 408 (0x198), region = 48  ;;  %s278_s17 = int_to_ptr.vmem [resolvable:$true] %s277_s17 }
  0x18   : > { %s258_s19 = sshll.u32 %s2515_s3, 4  ;;  %s2288_s3 = smov 4   ;;  %s259_s19 = int_to_ptr.hbm [resolvable:$true] %s258_s19 }
  0x19   : > { %2066 = dma.hbm_to_vmem [thread:$0]  (!%p2064_p13), %s259_s19, 6144, %s261_s21, [#allocation3], %s2284_s8, %s2284_s8, %s2285_s10  }
  0x1a   : > { %2069 = dma.hbm_to_vmem [thread:$0]  (!%p2064_p13), %s276_s30, 6144, %s278_s17, [#allocation6], %s2287_s18, %s2287_s18, %s2288_s3  }
  0x1c   : > { %2248 = dma.done.wait (%p2389_p11), [#allocation3], 6144  }
  0x1d   : > { %2250 = vsyncadd (%p2389_p11), [#allocation3], 4294961152 }
  0x1e   : > { %2252 = dma.done.wait (%p2389_p11), [#allocation6], 6144  }
  0x1f   : > { %2254 = vsyncadd (%p2389_p11), [#allocation6], 4294961152  ;;  %v459_v0 = vlaneseq  ;;  %p398_p0 = scmp.lt.s32.totalorder %s2273_s27, 1  ;;  %v1627_v2 = vld [vmem:[#allocation2 + $0xf0] sm:$0xf]  ;;  %vm450_vm1 = vcmask 1040384  }
  0x20   : > { %v1988_v3 = vld [vmem:[#allocation2 + $0xf4] sm:$0xf0]  ;;  %v1987_v4 = vld [vmem:[#allocation2 + $0xf4] sm:$0xf]  ;;  %v1629_v6 = vld [vmem:[#allocation2 + $0xf8] sm:$0xf0] }
  0x21   : > { %v2414_v1 = vshrl.u32 %v459_v0, 7  ;;  %v1628_v5 = vor.u32 %v1988_v3, %v1627_v2  ;;  %v1691_v7 = vld [vmem:[#allocation2 + $0x70] sm:$0xf]  ;;  %v1972_v8 = vld [vmem:[#allocation2 + $0x74] sm:$0xf0]  ;;  %v1632_v9 = vor.u32 %v1987_v4, %v1629_v6  ;;  %s399_s3 = scalar_select %p398_p0, %s2273_s27, 1 }
  0x22   : > { %v1692_v10 = vor.u32 %v1972_v8, %v1691_v7  ;;  %v1971_v11 = vld [vmem:[#allocation2 + $0x74] sm:$0xf]  ;;  %v1693_v12 = vld [vmem:[#allocation2 + $0x78] sm:$0xf0]  ;;  %v1619_v13 = vld [vmem:[#allocation2 + $0xe0] sm:$0xf] }
  0x23   : > { %607 = vmatpush.bf16.msra.mxu0 %v1628_v5  ;;  %v1696_v14 = vor.u32 %v1971_v11, %v1693_v12  ;;  %v1986_v15 = vld [vmem:[#allocation2 + $0xe4] sm:$0xf0]  ;;  %v1985_v16 = vld [vmem:[#allocation2 + $0xe4] sm:$0xf]  ;;  %v1621_v17 = vld [vmem:[#allocation2 + $0xe8] sm:$0xf0]  ;;  %621 = vmatpush.bf16.msra.mxu1 %v1632_v9 }
  0x24   : > { %715 = vmatpush.bf16.msra.mxu2 %v1692_v10  ;;  %v1620_v18 = vor.u32 %v1986_v15, %v1619_v13  ;;  %v1624_v19 = vor.u32 %v1985_v16, %v1621_v17  ;;  %v1683_v20 = vld [vmem:[#allocation2 + $0x60] sm:$0xf]  ;;  %v1970_v21 = vld [vmem:[#allocation2 + $0x64] sm:$0xf0]  ;;  %v1969_v22 = vld [vmem:[#allocation2 + $0x64] sm:$0xf] }
  0x25   : > { %729 = vmatpush.bf16.msra.mxu3 %v1696_v14  ;;  %v1684_v23 = vor.u32 %v1970_v21, %v1683_v20  ;;  %v1685_v24 = vld [vmem:[#allocation2 + $0x68] sm:$0xf0]  ;;  %v1611_v25 = vld [vmem:[#allocation2 + $0xd0] sm:$0xf]  ;;  %v1984_v26 = vld [vmem:[#allocation2 + $0xd4] sm:$0xf0] }
  0x26   : > { %v1688_v27 = vor.u32 %v1969_v22, %v1685_v24  ;;  %v1983_v28 = vld [vmem:[#allocation2 + $0xd4] sm:$0xf]  ;;  %v1613_v29 = vld [vmem:[#allocation2 + $0xd8] sm:$0xf0]  ;;  %v1675_v30 = vld [vmem:[#allocation2 + $0x50] sm:$0xf]  ;;  %v1612_v31 = vor.u32 %v1984_v26, %v1611_v25 }
  0x27   : > { %608 = vmatpush.bf16.msra.mxu0 %v1620_v18  ;;  %v1968_v32 = vld [vmem:[#allocation2 + $0x54] sm:$0xf0]  ;;  %v1967_v33 = vld [vmem:[#allocation2 + $0x54] sm:$0xf]  ;;  %v1677_v34 = vld [vmem:[#allocation2 + $0x58] sm:$0xf0]  ;;  %622 = vmatpush.bf16.msra.mxu1 %v1624_v19  ;;  %v1616_v35 = vor.u32 %v1983_v28, %v1613_v29 }
  0x28   : > { %716 = vmatpush.bf16.msra.mxu2 %v1684_v23  ;;  %v1676_v36 = vor.u32 %v1968_v32, %v1675_v30  ;;  %v1603_v37 = vld [vmem:[#allocation2 + $0xc0] sm:$0xf]  ;;  %v1982_v38 = vld [vmem:[#allocation2 + $0xc4] sm:$0xf0]  ;;  %v1981_v39 = vld [vmem:[#allocation2 + $0xc4] sm:$0xf]  ;;  %v1680_v40 = vor.u32 %v1967_v33, %v1677_v34 }
  0x29   : > { %730 = vmatpush.bf16.msra.mxu3 %v1688_v27  ;;  %v1605_v41 = vld [vmem:[#allocation2 + $0xc8] sm:$0xf0]  ;;  %v1667_v42 = vld [vmem:[#allocation2 + $0x40] sm:$0xf]  ;;  %v1966_v43 = vld [vmem:[#allocation2 + $0x44] sm:$0xf0]  ;;  %v1604_v46 = vor.u32 %v1982_v38, %v1603_v37 }
  0x2a   : > { %v1965_v44 = vld [vmem:[#allocation2 + $0x44] sm:$0xf]  ;;  %v1669_v45 = vld [vmem:[#allocation2 + $0x48] sm:$0xf0]  ;;  %v2420_v47 = vadd.s32 8, %v2414_v1  ;;  %v2423_v48 = vadd.s32 4294967294, %v2414_v1  ;;  %v1608_v49 = vor.u32 %v1981_v39, %v1605_v41  ;;  %v1668_v50 = vor.u32 %v1966_v43, %v1667_v42 }
  0x2b   : > { %609 = vmatpush.bf16.msra.mxu0 %v1612_v31  ;;  %623 = vmatpush.bf16.msra.mxu1 %v1616_v35  ;;  %v1595_v51 = vld [vmem:[#allocation2 + $0xb0] sm:$0xf]  ;;  %v1980_v52 = vld [vmem:[#allocation2 + $0xb4] sm:$0xf0]  ;;  %v1979_v53 = vld [vmem:[#allocation2 + $0xb4] sm:$0xf]  ;;  %v1672_v54 = vor.u32 %v1965_v44, %v1669_v45 }
  0x2c   : > { %717 = vmatpush.bf16.msra.mxu2 %v1676_v36  ;;  %v1597_v55 = vld [vmem:[#allocation2 + $0xb8] sm:$0xf0]  ;;  %v1659_v56 = vld [vmem:[#allocation2 + $0x30] sm:$0xf]  ;;  %v1964_v57 = vld [vmem:[#allocation2 + $0x34] sm:$0xf0]  ;;  %v1596_v60 = vor.u32 %v1980_v52, %v1595_v51 }
  0x2d   : > { %731 = vmatpush.bf16.msra.mxu3 %v1680_v40  ;;  %v1963_v58 = vld [vmem:[#allocation2 + $0x34] sm:$0xf]  ;;  %v1661_v59 = vld [vmem:[#allocation2 + $0x38] sm:$0xf0]  ;;  %s2425_s15 = sshll.u32 %s399_s3, 2  ;;  %v464_v61 = vadd.s32 4294967294, %v2420_v47  ;;  %v1600_v62 = vor.u32 %v1979_v53, %v1597_v55  ;;  %v1660_v63 = vor.u32 %v1964_v57, %v1659_v56 }
  0x2e   : > { %vm465_vm0 = vcmp.ge.s32.totalorder %v2423_v48, 0  ;;  %v1587_v0 = vld [vmem:[#allocation2 + $0xa0] sm:$0xf]  ;;  %v1978_v2 = vld [vmem:[#allocation2 + $0xa4] sm:$0xf0]  ;;  %v1664_v4 = vor.u32 %v1963_v58, %v1661_v59  ;;  %s404_s20 = scalar_lea.vmem %s2502_s0, %s2425_s15  ;;  %s414_s23 = scalar_lea.vmem %s2503_s1, %s2425_s15  ;;  %v2289_v27 = vmov 0  }
  0x2f   : > { %610 = vmatpush.bf16.msra.mxu0 %v1604_v46  ;;  %624 = vmatpush.bf16.msra.mxu1 %v1608_v49  ;;  %v1977_v3 = vld [vmem:[#allocation2 + $0xa4] sm:$0xf]  ;;  %v1589_v5 = vld [vmem:[#allocation2 + $0xa8] sm:$0xf0]  ;;  %v1651_v6 = vld [vmem:[#allocation2 + $0x20] sm:$0xf]  ;;  %v1588_v11 = vor.u32 %v1978_v2, %v1587_v0  ;;  %s427_s10 = scalar_lea.vmem %s2504_s2, %s2425_s15  ;;  %v480_v28 = vunpack.c.l.b16 %v2289_v27  ;;  %v481_v29 = vunpack.c.h.b16 %v2289_v27 }
  0x30   : > { %718 = vmatpush.bf16.msra.mxu2 %v1668_v50  ;;  %v1962_v7 = vld [vmem:[#allocation2 + $0x24] sm:$0xf0]  ;;  %v1961_v8 = vld [vmem:[#allocation2 + $0x24] sm:$0xf]  ;;  %v1653_v9 = vld [vmem:[#allocation2 + $0x28] sm:$0xf0]  ;;  %v1592_v15 = vor.u32 %v1977_v3, %v1589_v5 }
  0x31   : > { %732 = vmatpush.bf16.msra.mxu3 %v1672_v54  ;;  %v1579_v10 = vld [vmem:[#allocation2 + $0x90] sm:$0xf]  ;;  %v1976_v12 = vld [vmem:[#allocation2 + $0x94] sm:$0xf0]  ;;  %v1975_v13 = vld [vmem:[#allocation2 + $0x94] sm:$0xf]  ;;  %v1652_v16 = vor.u32 %v1962_v7, %v1651_v6  ;;  %v1656_v20 = vor.u32 %v1961_v8, %v1653_v9 }
  0x32   : > { %v1581_v14 = vld [vmem:[#allocation2 + $0x98] sm:$0xf0]  ;;  %v1643_v17 = vld [vmem:[#allocation2 + $0x10] sm:$0xf]  ;;  %v1960_v18 = vld [vmem:[#allocation2 + $0x14] sm:$0xf0]  ;;  %v1580_v30 = vor.u32 %v1976_v12, %v1579_v10 }
  0x33   : > { %611 = vmatpush.bf16.msra.mxu0 %v1596_v60  ;;  %625 = vmatpush.bf16.msra.mxu1 %v1600_v62  ;;  %v1959_v19 = vld [vmem:[#allocation2 + $0x14] sm:$0xf]  ;;  %v1645_v21 = vld [vmem:[#allocation2 + $0x18] sm:$0xf0]  ;;  %v1571_v22 = vld [vmem:[#allocation2 + $0x80] sm:$0xf]  ;;  %v1584_v31 = vor.u32 %v1975_v13, %v1581_v14  ;;  %v1644_v35 = vor.u32 %v1960_v18, %v1643_v17 }
  0x34   : > { %719 = vmatpush.bf16.msra.mxu2 %v1660_v63  ;;  %v1974_v23 = vld [vmem:[#allocation2 + $0x84] sm:$0xf0]  ;;  %v2441_v24 = vld [vmem:[#allocation2 + $0x84] sm:$0xf]  ;;  %v1573_v25 = vld [vmem:[#allocation2 + $0x88] sm:$0xf0]  ;;  %v1648_v41 = vor.u32 %v1959_v19, %v1645_v21 }
  0x35   : > { %733 = vmatpush.bf16.msra.mxu3 %v1664_v4  ;;  %v435_v26 = vld [vmem:[%s404_s20] sm:$0xf]  ;;  %vm468_vm2 = vcmp.lt.s32.totalorder %v464_v61, 8  ;;  %vm471_vm3 = vmpackc.low %vm465_vm0, %vm465_vm0  ;;  %v1958_v37 = vld [vmem:[#allocation2 + $0x4] sm:$0xf0]  ;;  %v1572_v46 = vor.u32 %v1974_v23, %v1571_v22  ;;  %v1576_v54 = vor.u32 %v2441_v24, %v1573_v25  ;;  %vm454_vm5 = vcmask 1044480  }
  0x36   : > { %v436_v32 = vld [vmem:[%s414_s23] sm:$0xf]  ;;  %v443_v34 = vunpack.c.l.b16 %v435_v26  ;;  %vm472_vm4 = vmpackc.low %vm468_vm2, %vm468_vm2  ;;  %v473_v40 = vsel %vm471_vm3, 65537, %v2289_v27  ;;  %v1957_v42 = vld [vmem:[#allocation2 + $0x4] sm:$0xf]  ;;  %s395_s18 = sand.u32 1, %s2265_s25  }
  0x37   : > { %612 = vmatpush.bf16.msra.mxu0 %v1588_v11  ;;  %v437_v33 = vld [vmem:[%s427_s10] sm:$0xf]  ;;  %626 = vmatpush.bf16.msra.mxu1 %v1592_v15  ;;  %v439_v38 = vunpack.c.l.b16 %v436_v32  ;;  %v474_v44 = vsel %vm472_vm4, 65537, %v2289_v27  ;;  %v475_v45 = vunpack.c.l.b16 %v473_v40  ;;  %v1637_v49 = vld [vmem:[#allocation2 + $0x8] sm:$0xf0]  ;;  %s1563_s3 = sshll.u32 %s395_s18, 3 }
  0x38   : > { %720 = vmatpush.bf16.msra.mxu2 %v1652_v16  ;;  %v1635_v36 = vld [vmem:[#allocation2] sm:$0xf]  ;;  %v447_v39 = vunpack.c.l.b16 %v437_v33  ;;  %v444_v43 = vpack.c.b16 %v443_v34, %v443_v34  ;;  %v1755_v48 = vld [vmem:[#allocation2 + $0x170] sm:$0xf]  ;;  %v2004_v50 = vld [vmem:[#allocation2 + $0x174] sm:$0xf0]  ;;  %v476_v53 = vunpack.c.l.b16 %v474_v44  ;;  %v1640_v63 = vor.u32 %v1957_v42, %v1637_v49 }
  0x39   : > { %734 = vmatpush.bf16.msra.mxu3 %v1656_v20  ;;  %v440_v51 = vpack.c.b16 %v439_v38, %v439_v38  ;;  %v1636_v55 = vor.u32 %v1958_v37, %v1635_v36  ;;  %v2003_v56 = vld [vmem:[#allocation2 + $0x174] sm:$0xf]  ;;  %v1757_v57 = vld [vmem:[#allocation2 + $0x178] sm:$0xf0]  ;;  %v1567_v59 = vunpack.i.l.s16 %v475_v45  ;;  %v1756_v0 = vor.u32 %v2004_v50, %v1755_v48  ;;  %v1747_v4 = vld [vmem:[#allocation2 + $0x160] sm:$0xf] }
  0x3a   : > { %v448_v52 = vpack.c.b16 %v447_v39, %v447_v39  ;;  %v445_v58 = vrot.slane %v444_v43, 7  ;;  %v1568_v62 = vunpack.i.l.s16 %v476_v53  ;;  %v1760_v2 = vor.u32 %v2003_v56, %v1757_v57  ;;  %v2002_v5 = vld [vmem:[#allocation2 + $0x164] sm:$0xf0]  ;;  %v2001_v7 = vld [vmem:[#allocation2 + $0x164] sm:$0xf]  ;;  %v2028_v56 = vld [vmem:[#allocation5 + $0xb8] sm:$0xff] }
  0x3b   : > { %613 = vmatpush.bf16.msra.mxu0 %v1580_v30  ;;  %627 = vmatpush.bf16.msra.mxu1 %v1584_v31  ;;  %v441_v60 = vrot.slane %v440_v51, 3  ;;  %vm482_vm6 = vcmp.ne.s32.totalorder %v1567_v59, %v480_v28  ;;  %v1749_v8 = vld [vmem:[#allocation2 + $0x168] sm:$0xf0]  ;;  %v1748_v10 = vor.u32 %v2002_v5, %v1747_v4  ;;  %v1739_v14 = vld [vmem:[#allocation2 + $0x150] sm:$0xf]  ;;  %v2036_v57 = vld [vmem:[#allocation5 + $0xf8] sm:$0xff] }
  0x3c   : > { %721 = vmatpush.bf16.msra.mxu2 %v1644_v35  ;;  %v449_v61 = vrot.slane %v448_v52, 3  ;;  %vm483_vm7 = vcmp.ne.s32.totalorder %v1568_v62, %v481_v29  ;;  %v1752_v13 = vor.u32 %v2001_v7, %v1749_v8  ;;  %v2000_v15 = vld [vmem:[#allocation2 + $0x154] sm:$0xf0]  ;;  %v1999_v17 = vld [vmem:[#allocation2 + $0x154] sm:$0xf]  ;;  %v2010_v62 = vld [vmem:[#allocation5 + $0x28] sm:$0xff] }
  0x3d   : > { %735 = vmatpush.bf16.msra.mxu3 %v1648_v41  ;;  %v453_v3 = vsel %vm450_vm1, %v441_v60, %v445_v58  ;;  %vm484_vm8 = vmpackc.low %vm483_vm7, %vm482_vm6  ;;  %v1741_v18 = vld [vmem:[#allocation2 + $0x158] sm:$0xf0]  ;;  %v1740_v20 = vor.u32 %v2000_v15, %v1739_v14  ;;  %v1731_v22 = vld [vmem:[#allocation2 + $0x140] sm:$0xf]  ;;  %s1954_s15 = sshll.u32 %s2273_s27, 3  ;;  %vm1407_vm11 = vcmask 1045504  }
  0x3e   : > { %v456_v6 = vsel %vm454_vm5, %v453_v3, %v449_v61  ;;  %v1744_v21 = vor.u32 %v1999_v17, %v1741_v18  ;;  %v1998_v23 = vld [vmem:[#allocation2 + $0x144] sm:$0xf0]  ;;  %v1997_v24 = vld [vmem:[#allocation2 + $0x144] sm:$0xf]  ;;  %v1733_v25 = vld [vmem:[#allocation2 + $0x148] sm:$0xf0]  ;;  %s1426_s22 = scalar_lea.hbm %s2509_s7, %s1954_s15 }
  0x3f   : > { %614 = vmatpush.bf16.msra.mxu0 %v1572_v46  ;;  %628 = vmatpush.bf16.msra.mxu1 %v1576_v54  ;;  %v2448_v9 = vsel %vm484_vm8, %v456_v6, 0  ;;  %v1732_v26 = vor.u32 %v1998_v23, %v1731_v22  ;;  %v1736_v27 = vor.u32 %v1997_v24, %v1733_v25  ;;  %v1723_v28 = vld [vmem:[#allocation2 + $0x130] sm:$0xf]  ;;  %v1996_v29 = vld [vmem:[#allocation2 + $0x134] sm:$0xf0]  ;;  %v2009_v3 = vld [vmem:[#allocation5 + $0x20] sm:$0xff] }
  0x40   : > { %722 = vmatpush.bf16.msra.mxu2 %v1636_v55  ;;  %v520_v11 = vshrl.u32 %v2448_v9, 16  ;;  %v522_v12 = vshll.u32 %v2448_v9, 16  ;;  %v1995_v30 = vld [vmem:[#allocation2 + $0x134] sm:$0xf]  ;;  %v1725_v31 = vld [vmem:[#allocation2 + $0x138] sm:$0xf0]  ;;  %v1724_v32 = vor.u32 %v1996_v29, %v1723_v28 }
  0x41   : > { %736 = vmatpush.bf16.msra.mxu3 %v1640_v63  ;;  %v1728_v33 = vor.u32 %v1995_v30, %v1725_v31  ;;  %v1715_v34 = vld [vmem:[#allocation2 + $0x120] sm:$0xf]  ;;  %v1994_v35 = vld [vmem:[#allocation2 + $0x124] sm:$0xf0]  ;;  %v1993_v36 = vld [vmem:[#allocation2 + $0x124] sm:$0xf] }
  0x42   : > { %v524_v16 = vrot.slane %v522_v12, 1  ;;  %v1717_v37 = vld [vmem:[#allocation2 + $0x128] sm:$0xf0]  ;;  %v1716_v38 = vor.u32 %v1994_v35, %v1715_v34  ;;  %v1707_v40 = vld [vmem:[#allocation2 + $0x110] sm:$0xf]  ;;  %v761_v53 = vrot.slane %v2448_v9, 1 }
  0x43   : > { %843 = vmatpush.bf16.msrb.mxu0 %v1756_v0  ;;  %857 = vmatpush.bf16.msrb.mxu1 %v1760_v2  ;;  %v1720_v39 = vor.u32 %v1993_v36, %v1717_v37  ;;  %v1992_v41 = vld [vmem:[#allocation2 + $0x114] sm:$0xf0]  ;;  %v1991_v42 = vld [vmem:[#allocation2 + $0x114] sm:$0xf]  ;;  %v1709_v43 = vld [vmem:[#allocation2 + $0x118] sm:$0xf0] }
  0x44   : > { %723 = vmatmul.bf16.vlgmr.msra.gmra.mxu2 %v2448_v9  ;;  %737 = vmatmul.bf16.vlgmr.msra.gmra.mxu3 %v2448_v9  ;;  %v525_v19 = vor.u32 %v524_v16, %v520_v11  ;;  %v1708_v44 = vor.u32 %v1992_v41, %v1707_v40  ;;  %v1712_v45 = vor.u32 %v1991_v42, %v1709_v43  ;;  %v1699_v46 = vld [vmem:[#allocation2 + $0x100] sm:$0xf]  ;;  %v1990_v49 = vld [vmem:[#allocation2 + $0x104] sm:$0xf0]  ;;  %v1989_v48 = vld [vmem:[#allocation2 + $0x104] sm:$0xf] }
  0x45   : > { %v1701_v50 = vld [vmem:[#allocation2 + $0x108] sm:$0xf0]  ;;  %v1700_v51 = vor.u32 %v1990_v49, %v1699_v46  ;;  %v2012_v54 = vld [vmem:[#allocation5 + $0x38] sm:$0xff]  ;;  %1086 = vmatpush.bf16.msrb.mxu2 %v2028_v56  ;;  %1099 = vmatpush.bf16.msrb.mxu3 %v2036_v57  ;;  %v2011_v58 = vld [vmem:[#allocation5 + $0x30] sm:$0xff]  ;;  %v887_v43 = vadd.s32 4294967295, %v2414_v1  ;;  %s397_s23 = scalar_lea.vmem [#allocation7], %s1563_s3 }
  0x46   : > { %615 = vmatmul.bf16.vlgmr.msra.gmra.mxu0 %v525_v19  ;;  %629 = vmatmul.bf16.vlgmr.msra.gmra.mxu1 %v525_v19  ;;  %v1704_v52 = vor.u32 %v1989_v48, %v1701_v50  ;;  %v2020_v55 = vld [vmem:[#allocation5 + $0x78] sm:$0xff]  ;;  %v2019_v59 = vld [vmem:[#allocation5 + $0x70] sm:$0xff]  ;;  %v2018_v63 = vld [vmem:[#allocation5 + $0x68] sm:$0xff]  ;;  %s1428_s27 = sshll.u32 %s397_s23, 4  ;;  %s1430_s30 = sshll.u32 %s1426_s22, 4  ;;  %s1429_s27 = int_to_ptr.vmem [resolvable:$true] %s1428_s27  ;;  %s1431_s30 = int_to_ptr.hbm [resolvable:$true] %s1430_s30 }
  0x47   : > { %844 = vmatpush.bf16.msrb.mxu0 %v1748_v10  ;;  %858 = vmatpush.bf16.msrb.mxu1 %v1752_v13  ;;  %v2027_v60 = vld [vmem:[#allocation5 + $0xb0] sm:$0xff]  ;;  %v2026_v0 = vld [vmem:[#allocation5 + $0xa8] sm:$0xff]  ;;  %v2017_v4 = vld [vmem:[#allocation5 + $0x60] sm:$0xff]  ;;  %vm889_vm9 = vcmp.ge.s32.totalorder %v887_v43, 0  ;;  %s1415_s8 = scalar_lea.sflag [#allocation4], %s395_s18  ;;  %s2209_s10 = sshra.s32 %s1431_s30, 4  ;;  %s2210_s10 = int_to_ptr.hbm [resolvable:$true] %s2209_s10 }
  0x48   : > { %v2035_v61 = vld [vmem:[#allocation5 + $0xf0] sm:$0xff]  ;;  %v2034_v2 = vld [vmem:[#allocation5 + $0xe8] sm:$0xff]  ;;  %v2025_v5 = vld [vmem:[#allocation5 + $0xa0] sm:$0xff]  ;;  %s2211_s12 = scalar_lea.hbm %s2210_s10, 8  ;;  %s2215_s3 = scalar_lea.hbm %s2509_s7, 16 }
  0x49   : > { %1087 = vmatpush.bf16.msrb.mxu2 %v2027_v60  ;;  %1100 = vmatpush.bf16.msrb.mxu3 %v2035_v61  ;;  %v2033_v6 = vld [vmem:[#allocation5 + $0xe0] sm:$0xff]  ;;  %v2008_v7 = vld [vmem:[#allocation5 + $0x18] sm:$0xff]  ;;  %v2007_v12 = vld [vmem:[#allocation5 + $0x10] sm:$0xff]  ;;  %p2212_p1 = scmp.ne.s32.totalorder %s2210_s10, %s2211_s12  ;;  %p2216_p5 = scmp.lt.s32.totalorder %s2210_s10, %s2509_s7 }
  0x4a   : > { %v2016_v8 = vld [vmem:[#allocation5 + $0x58] sm:$0xff]  ;;  %v2015_v13 = vld [vmem:[#allocation5 + $0x50] sm:$0xff]  ;;  %v2006_v16 = vld [vmem:[#allocation5 + $0x8] sm:$0xff]  ;;  %p2217_p6 = scmp.lt.s32.totalorder %s2215_s3, %s2211_s12 }
  0x4b   : > { %845 = vmatpush.bf16.msrb.mxu0 %v1740_v20  ;;  %859 = vmatpush.bf16.msrb.mxu1 %v1744_v21  ;;  %v2024_v10 = vld [vmem:[#allocation5 + $0x98] sm:$0xff]  ;;  %v2023_v14 = vld [vmem:[#allocation5 + $0x90] sm:$0xff]  ;;  %v2014_v17 = vld [vmem:[#allocation5 + $0x48] sm:$0xff]  ;;  %p2213_p2 = pnand %p2212_p1, %p2370_p4 }
  0x4c   : > { %v2032_v11 = vld [vmem:[#allocation5 + $0xd8] sm:$0xff]  ;;  %v2031_v15 = vld [vmem:[#allocation5 + $0xd0] sm:$0xff]  ;;  %v2022_v18 = vld [vmem:[#allocation5 + $0x88] sm:$0xff]  ;;  %p2218_p7 = por %p2217_p6, %p2216_p5 }
  0x4d   : > { %1088 = vmatpush.bf16.msrb.mxu2 %v2026_v0  ;;  %1101 = vmatpush.bf16.msrb.mxu3 %v2034_v2  ;;  %v2030_v19 = vld [vmem:[#allocation5 + $0xc8] sm:$0xff]  ;;  %v2005_v20 = vld [vmem:[#allocation5] sm:$0xff]  ;;  %v2044_v24 = vld [vmem:[#allocation5 + $0x138] sm:$0xff]  ;;  %p2214_p3 = pneg %p2213_p2 }
  0x4e   : > { %v2013_v21 = vld [vmem:[#allocation5 + $0x40] sm:$0xff]  ;;  %v2052_v25 = vld [vmem:[#allocation5 + $0x178] sm:$0xff]  ;;  %v2051_v28 = vld [vmem:[#allocation5 + $0x170] sm:$0xff] }
  0x4f   : > { %846 = vmatpush.bf16.msrb.mxu0 %v1732_v26  ;;  %860 = vmatpush.bf16.msrb.mxu1 %v1736_v27  ;;  %v2021_v22 = vld [vmem:[#allocation5 + $0x80] sm:$0xff]  ;;  %v2043_v27 = vld [vmem:[#allocation5 + $0x130] sm:$0xff]  ;;  %v2042_v30 = vld [vmem:[#allocation5 + $0x128] sm:$0xff]  ;;  %p2219_p9 = pnand %p2218_p7, %p2214_p3 }
  0x50   : > { %v2029_v23 = vld [vmem:[#allocation5 + $0xc0] sm:$0xff]  ;;  %v2050_v31 = vld [vmem:[#allocation5 + $0x168] sm:$0xff]  ;;  %v2040_v37 = vld [vmem:[#allocation5 + $0x118] sm:$0xff] }
  0x51   : > { %1089 = vmatpush.bf16.msrb.mxu2 %v2025_v5  ;;  %1102 = vmatpush.bf16.msrb.mxu3 %v2033_v6  ;;  %v875_v40 = vld [vmem:[%s2506_s4] sm:$0x3]  ;;  %v2039_v41 = vld [vmem:[#allocation5 + $0x110] sm:$0xff]  ;;  %v2038_v50 = vld [vmem:[#allocation5 + $0x108] sm:$0xff] }
  0x52   : > { %v2047_v42 = vld [vmem:[#allocation5 + $0x150] sm:$0xff]  ;;  %v878_v48 = vperm.slane %v875_v40, 1  ;;  %v2045_v1 = vld [vmem:[#allocation5 + $0x140] sm:$0xff] }
  0x53   : > { %847 = vmatpush.bf16.msrb.mxu0 %v1724_v32  ;;  %861 = vmatpush.bf16.msrb.mxu1 %v1728_v33  ;;  %v2041_v32 = vld [vmem:[#allocation5 + $0x120] sm:$0xff] }
  0x54   : > { %v2049_v33 = vld [vmem:[#allocation5 + $0x160] sm:$0xff] }
  0x55   : > { %1090 = vmatpush.bf16.msrb.mxu2 %v2024_v10  ;;  %1103 = vmatpush.bf16.msrb.mxu3 %v2032_v11 }
  0x57   : > { %848 = vmatpush.bf16.msrb.mxu0 %v1716_v38  ;;  %862 = vmatpush.bf16.msrb.mxu1 %v1720_v39  ;;  %v2048_v38 = vld [vmem:[#allocation5 + $0x158] sm:$0xff] }
  0x59   : > { %1091 = vmatpush.bf16.msrb.mxu2 %v2023_v14  ;;  %1104 = vmatpush.bf16.msrb.mxu3 %v2031_v15 }
  0x5b   : > { %849 = vmatpush.bf16.msrb.mxu0 %v1708_v44  ;;  %863 = vmatpush.bf16.msrb.mxu1 %v1712_v45  ;;  %v877_v45 = vperm.slane %v875_v40, 0  ;;  %v1404_v40 = vunpack.c.h.bf16 %v2448_v9 }
  0x5d   : > { %1092 = vmatpush.bf16.msrb.mxu2 %v2022_v18  ;;  %1105 = vmatpush.bf16.msrb.mxu3 %v2030_v19 }
  0x5f   : > { %850 = vmatpush.bf16.msrb.mxu0 %v1700_v51  ;;  %864 = vmatpush.bf16.msrb.mxu1 %v1704_v52  ;;  %v2046_v51 = vld [vmem:[#allocation5 + $0x148] sm:$0xff] }
  0x61   : > { %1093 = vmatpush.bf16.msrb.mxu2 %v2021_v22  ;;  %1106 = vmatpush.bf16.msrb.mxu3 %v2029_v23 }
  0x62   : > { %851 = vmatmul.bf16.vlgmr.msrb.gmra.mxu0 %v761_v53  ;;  %865 = vmatmul.bf16.vlgmr.msrb.gmra.mxu1 %v761_v53 }
  0x63   : > { %1212 = vmatpush.bf16.msra.mxu0 %v2012_v54  ;;  %1225 = vmatpush.bf16.msra.mxu1 %v2020_v55 }
  0x65   : > { %1371 = vmatpush.bf16.msra.mxu2 %v2044_v24  ;;  %1384 = vmatpush.bf16.msra.mxu3 %v2052_v25 }
  0x67   : > { %1213 = vmatpush.bf16.msra.mxu0 %v2011_v58  ;;  %1226 = vmatpush.bf16.msra.mxu1 %v2019_v59  ;;  %v2037_v58 = vld [vmem:[#allocation5 + $0x100] sm:$0xff] }
  0x69   : > { %1372 = vmatpush.bf16.msra.mxu2 %v2043_v27  ;;  %1385 = vmatpush.bf16.msra.mxu3 %v2051_v28 }
  0x6b   : > { %1214 = vmatpush.bf16.msra.mxu0 %v2010_v62  ;;  %1227 = vmatpush.bf16.msra.mxu1 %v2018_v63  ;;  %v888_v62 = vadd.s32 4294967295, %v2420_v47 }
  0x6d   : > { %1373 = vmatpush.bf16.msra.mxu2 %v2042_v30  ;;  %1386 = vmatpush.bf16.msra.mxu3 %v2050_v31  ;;  %vm892_vm10 = vcmp.lt.s32.totalorder %v888_v62, 8 }
  0x6f   : > { %1215 = vmatpush.bf16.msra.mxu0 %v2009_v3  ;;  %1228 = vmatpush.bf16.msra.mxu1 %v2017_v4 }
  0x71   : > { %1374 = vmatpush.bf16.msra.mxu2 %v2041_v32  ;;  %1387 = vmatpush.bf16.msra.mxu3 %v2049_v33 }
  0x73   : > { %1216 = vmatpush.bf16.msra.mxu0 %v2008_v7  ;;  %1229 = vmatpush.bf16.msra.mxu1 %v2016_v8 }
  0x75   : > { %1375 = vmatpush.bf16.msra.mxu2 %v2040_v37  ;;  %1388 = vmatpush.bf16.msra.mxu3 %v2048_v38 }
  0x77   : > { %1217 = vmatpush.bf16.msra.mxu0 %v2007_v12  ;;  %1230 = vmatpush.bf16.msra.mxu1 %v2015_v13 }
  0x79   : > { %1376 = vmatpush.bf16.msra.mxu2 %v2039_v41  ;;  %1389 = vmatpush.bf16.msra.mxu3 %v2047_v42 }
  0x7b   : > { %1218 = vmatpush.bf16.msra.mxu0 %v2006_v16  ;;  %1231 = vmatpush.bf16.msra.mxu1 %v2014_v17 }
  0x7d   : > { %1377 = vmatpush.bf16.msra.mxu2 %v2038_v50  ;;  %1390 = vmatpush.bf16.msra.mxu3 %v2046_v51 }
  0x7f   : > { %1219 = vmatpush.bf16.msra.mxu0 %v2005_v20  ;;  %1232 = vmatpush.bf16.msra.mxu1 %v2013_v21 }
  0x81   : > { %1378 = vmatpush.bf16.msra.mxu2 %v2037_v58  ;;  %1391 = vmatpush.bf16.msra.mxu3 %v2045_v1 }
  0xc3   : > { %v616_v26 = vpop.f32.mrf.mxu0  ;;  %v630_v29 = vpop.f32.mrf.mxu1 }
  0xc7   : > { %v724_v36 = vpop.f32.mrf.mxu2  ;;  %v738_v39 = vpop.f32.mrf.mxu3 }
  0xc8   : > { %v725_v44 = vadd.f32 %v724_v36, %v616_v26  ;;  %v739_v46 = vadd.f32 %v738_v39, %v630_v29  ;;  %v1403_v39 = vunpack.c.l.bf16 %v2448_v9 }
  0xcb   : > { %v618_v34 = vpop.f32.mrf.mxu0  ;;  %v632_v35 = vpop.f32.mrf.mxu1 }
  0xcf   : > { %v726_v56 = vpop.f32.mrf.mxu2  ;;  %v740_v59 = vpop.f32.mrf.mxu3 }
  0xd0   : > { %v727_v63 = vadd.f32 %v726_v56, %v618_v34  ;;  %v741_v2 = vadd.f32 %v740_v59, %v632_v35 }
  0xdf   : > { %v852_v49 = vpop.f32.mrf.mxu0  ;;  %v866_v53 = vpop.f32.mrf.mxu1 }
  0xe0   : > { %v871_v52 = vadd.f32 %v852_v49, %v725_v44  ;;  %v872_v54 = vadd.f32 %v866_v53, %v739_v46  ;;  %v1408_v44 = vrot.slane %v1403_v39, 2 }
  0xe2   : > { %v881_v55 = vadd.f32 %v877_v45, %v871_v52  ;;  %v882_v57 = vadd.f32 %v878_v48, %v872_v54 }
  0xe4   : > { %v895_v60 = vsel %vm889_vm9, %v881_v55, 0.0  ;;  %v896_v61 = vsel %vm889_vm9, %v882_v57, 0.0 }
  0xe5   : > { %v899_v0 = vpack.c.bf16 %v896_v61, %v895_v60 }
  0xe7   : > { %v854_v3 = vpop.f32.mrf.mxu0  ;;  %v968_v4 = vunpack.c.l.b16 %v899_v0  ;;  %v969_v5 = vunpack.c.h.b16 %v899_v0  ;;  %v868_v7 = vpop.f32.mrf.mxu1 }
  0xe8   : > { %v873_v6 = vadd.f32 %v854_v3, %v727_v63  ;;  %v874_v8 = vadd.f32 %v868_v7, %v741_v2 }
  0xe9   : > { %v1112_v11 = vpack.c.b16 %v968_v4, %v968_v4  ;;  %v1113_v12 = vpack.c.b16 %v969_v5, %v969_v5 }
  0xea   : > { %v883_v10 = vadd.f32 %v877_v45, %v873_v6  ;;  %v884_v13 = vadd.f32 %v878_v48, %v874_v8  ;;  %v1409_v45 = vrot.slane %v1404_v40, 2  ;;  %v2134_v48 = vld [vmem:[%s2508_s6] ss:$0 sm:$0xff] }
  0xeb   : > { %1220 = vmatmul.bf16.vlgmr.msra.gmra.mxu0 %v1112_v11  ;;  %1233 = vmatmul.bf16.vlgmr.msra.gmra.mxu1 %v1113_v12 }
  0xec   : > { %v897_v14 = vsel %vm892_vm10, %v883_v10, 0.0  ;;  %v898_v47 = vsel %vm892_vm10, %v884_v13, 0.0  ;;  %v1410_v9 = vsel %vm1407_vm11, %v1408_v44, %v1409_v45 }
  0xed   : > { %v900_v15 = vpack.c.bf16 %v898_v47, %v897_v14 }
  0xef   : > { %v970_v16 = vunpack.c.l.b16 %v900_v15  ;;  %v971_v17 = vunpack.c.h.b16 %v900_v15 }
  0xf1   : > { %v972_v18 = vpack.c.b16 %v970_v16, %v968_v4  ;;  %v973_v19 = vpack.c.b16 %v971_v17, %v969_v5 }
  0xf3   : > { %v977_v20 = vshll.u32 %v972_v18, 16  ;;  %v984_v21 = vshll.u32 %v973_v19, 16  ;;  %v975_v22 = vshrl.u32 %v972_v18, 16  ;;  %v982_v24 = vshrl.u32 %v973_v19, 16 }
  0xf4   : > { %v1271_v28 = vrot.slane %v972_v18, 1  ;;  %v1272_v29 = vrot.slane %v973_v19, 1 }
  0xf5   : > { %v979_v23 = vrot.slane %v977_v20, 1  ;;  %v986_v25 = vrot.slane %v984_v21, 1 }
  0xf7   : > { %v980_v26 = vor.u32 %v979_v23, %v975_v22  ;;  %v987_v27 = vor.u32 %v986_v25, %v982_v24 }
  0xf9   : > { %1094 = vmatmul.bf16.vlgmr.msrb.gmra.mxu2 %v980_v26  ;;  %1107 = vmatmul.bf16.vlgmr.msrb.gmra.mxu3 %v987_v27 }
 0x109   : > { %1379 = vmatmul.bf16.vlgmr.msra.gmra.mxu2 %v1271_v28  ;;  %1392 = vmatmul.bf16.vlgmr.msra.gmra.mxu3 %v1272_v29 }
 0x168   : > { %v1221_v30 = vpop.f32.mrf.mxu0  ;;  %v1234_v31 = vpop.f32.mrf.mxu1 }
 0x170   : > { %v1223_v32 = vpop.f32.mrf.mxu0  ;;  %v1236_v33 = vpop.f32.mrf.mxu1 }
 0x17c   : > { %v1095_v34 = vpop.f32.mrf.mxu2  ;;  %v1108_v35 = vpop.f32.mrf.mxu3 }
 0x17d   : > { %v1109_v38 = vadd.f32 %v1108_v35, %v1095_v34 }
 0x17f   : > { %v1222_v41 = vadd.f32 %v1221_v30, %v1109_v38 }
 0x181   : > { %v1235_v46 = vadd.f32 %v1234_v31, %v1222_v41 }
 0x184   : > { %v1097_v36 = vpop.f32.mrf.mxu2  ;;  %v1110_v37 = vpop.f32.mrf.mxu3 }
 0x18c   : > { %v1380_v42 = vpop.f32.mrf.mxu2  ;;  %v1393_v43 = vpop.f32.mrf.mxu3 }
 0x18d   : > { %v1394_v49 = vadd.f32 %v1393_v43, %v1380_v42 }
 0x18f   : > { %v1397_v50 = vadd.f32 %v1394_v49, %v1235_v46 }
 0x191   : > { %v1402_v51 = vadd.f32 %v2134_v48, %v1397_v50 }
 0x193   : > { %v1412_v52 = vadd.f32 %v1410_v9, %v1402_v51 }
 0x194   : > { %v1382_v53 = vpop.f32.mrf.mxu2  ;;  %v1395_v54 = vpop.f32.mrf.mxu3 }
 0x195   : > { %1413 = vst [vmem:[%s397_s23] sm:$0xff] %v1412_v52 }
 0x196   : > { %2222 = shalt.err (!%p2219_p9)
}
 0x197   : > { %2061 = dma.vmem_to_hbm [thread:$0]  (%p2370_p4), %s1429_s27, 128, %s1431_s30, %s1415_s8  }
 0x198 PF: > { %p2078_p10 = scmp.ge.s32.totalorder %s2281_s29, 2  ;;  %s1442_s18 = sand.u32 1, %s2261_s24  }
 0x199   : > { %s1443_s20 = scalar_lea.sflag [#allocation4], %s1442_s18 }
 0x19a   : > { %p2071_p11 = pnand %p2078_p10, %p2377_p8 }
 0x19c   : > { %p2072_p12 = pneg %p2071_p11 }
 0x19e   : > { %2256 = dma.done.wait (%p2072_p12), %s1443_s20, 128  }
 0x19f   : > { %2258 = vsyncadd (%p2072_p12), %s1443_s20, 4294967168  ;;  %s22_s29 = sadd.s32 1, %s2281_s29   ;;  %s2516_s24 = smov %s2265_s25 }
 0x1a0   : > { %p19_p13 = scmp.ge.s32.totalorder %s22_s29, 4   ;;  %s2517_s25 = smov %s2269_s26 }
 0x1a1   : > { %s2518_s26 = smov %s2383_s14  ;;  %s2519_s27 = smov %s2277_s28 }
 0x1a2   : > { %s2520_s28 = smov %s2522_s9  ;;  %21 = sbr.rel (!%p19_p13) target bundleno = 8 (0x8), region = 102 }
 0x1a7   :  { %1449 = vsyncpa [#allocation3], 1 }
 0x1a8   :  { %1451 = vsyncpa [#allocation3 + $0x1], 1 }
 0x1a9   :  { %1452 = vsyncpa [#allocation6], 1 }
 0x1aa   :  { %1453 = vsyncpa [#allocation4], 1 }
 0x1ab   :  { %1455 = vsyncpa [#allocation4 + $0x1], 1 }

</bundles_post_ra>
